<compile_context>
chip_gen: v7x
topology: tpu7x:2x2x1
jax: 0.10.0
libtpu: 0.0.40
codegen_flags: <defaults>
</compile_context>

<pallas_src>
import math
import functools

import jax
import jax.numpy as jnp
from jax.experimental import pallas as pl
from jax.experimental.pallas import tpu as pltpu


def _round_up(x: int, m: int) -> int:
    return (x + m - 1) // m * m


def _equalised_matmul_kernel(a_ref, w_ref, b_ref, o_ref, acc_ref, *, c_scale):
    """One (tm, tn) output tile, accumulated over the K grid axis.

    a_ref:   [tm, tk] im2col patch tile (compute dtype)
    w_ref:   [tk, tn] raw (unscaled) flattened conv-weight tile (compute dtype)
    b_ref:   [1,  tn] bias tile (f32)
    o_ref:   [tm, tn] output tile
    acc_ref: [tm, tn] f32 VMEM accumulator (persists across the K axis)
    """
    k = pl.program_id(2)

    @pl.when(k == 0)
    def _init():
        acc_ref[...] = jnp.zeros_like(acc_ref)

    acc_ref[...] += jnp.dot(a_ref[...], w_ref[...],
                            preferred_element_type=jnp.float32)

    @pl.when(k == pl.num_programs(2) - 1)
    def _finalize():
        # Equalised-lr scale applied once per output tile on the f32
        # accumulator (A @ (c*W) == c * (A @ W)), then bias, then cast.
        o_ref[...] = (acc_ref[...] * c_scale + b_ref[...]).astype(o_ref.dtype)


def _im2col_nhwc(x_nchw, kh, kw, stride, padding, dilation):
    """x: [N, C, H, W] -> patches [N*OH*OW, KH*KW*C] (K ordered (KH, KW, C)),
    plus (N, OH, OW).

    The channel axis stays minor (lane) throughout, so the KH*KW-inflated
    tensor is never cross-lane transposed; the only transpose is on the small
    un-inflated input (NCHW -> NHWC)."""
    n, c, h, w = x_nchw.shape
    x = jnp.transpose(x_nchw, (0, 2, 3, 1))                         # [N, H, W, C]
    xp = jnp.pad(x, ((0, 0), (padding, padding), (padding, padding), (0, 0)))
    hp, wp = h + 2 * padding, w + 2 * padding
    oh = (hp - dilation * (kh - 1) - 1) // stride + 1
    ow = (wp - dilation * (kw - 1) - 1) // stride + 1
    cols = []
    for i in range(kh):
        for j in range(kw):
            r0 = i * dilation
            c0 = j * dilation
            cols.append(xp[:, r0:r0 + stride * (oh - 1) + 1:stride,
                           c0:c0 + stride * (ow - 1) + 1:stride, :])  # [N,OH,OW,C]
    col = jnp.stack(cols, axis=3)                                   # [N,OH,OW,KH*KW,C]
    return col.reshape(n * oh * ow, kh * kw * c), (n, oh, ow)


def equalised_conv2d(x, weight, bias=None, *, stride=1, padding=0, dilation=1,
                     compute_dtype=jnp.bfloat16, out_dtype=None):
    """Pallas forward of EqualisedConv2d.

    x:      [N, C, H, W]    float32
    weight: [OC, C, KH, KW] float32 (raw, unscaled; kernel applies c)
    bias:   [OC] float32 or None (use_bias=False)
    returns [N, OC, OH, OW] in out_dtype (default: x.dtype)
    """
    oc, cin, kh, kw = weight.shape
    c_scale = 1.0 / math.sqrt(cin * kh * kw)        # EqualisedWeight constant
    out_dtype = x.dtype if out_dtype is None else out_dtype

    # TODO(synk): for the stride=1/dilation=1 fast path the im2col expansion
    # could be fused into the kernel (KH,KW reduction grid axes over shifted
    # NHWC windows) to cut input HBM reads ~KH*KW; kept as (slimmed) plain-JAX
    # glue here for full stride/padding/dilation generality.
    patches, (n, oh, ow) = _im2col_nhwc(x.astype(compute_dtype), kh, kw,
                                        stride, padding, dilation)
    m, k = patches.shape

    if bias is None:
        bias = jnp.zeros((oc,), dtype=jnp.float32)

    # Weight flattened to K ordered (KH, KW, C) to match the patch layout.
    w_mat = jnp.transpose(weight.astype(compute_dtype),
                          (2, 3, 1, 0)).reshape(kh * kw * cin, oc)  # [K, OC]

    # --- Tile selection -------------------------------------------------------
    # Lane axes multiples of 128 (256 when OC is large, for the v6e/v7x 256-wide
    # MXU); sublane axis multiple of 8.  Large tm/tn raises per-K-step
    # arithmetic intensity (tm*tn/(tm+tn)) so the inner loop is MXU- rather than
    # HBM-bound, and halves re-reads of the big patches matrix across OC blocks.
    tk = min(512, _round_up(k, 128))
    tn = min(512, _round_up(oc, 256 if oc > 128 else 128))
    tm = min(2048, _round_up(m, 8))

    # Megacore-occupancy guard (v7x has 2 TensorCores): ensure >= 2 parallel
    # (M, OC) output blocks when possible, preferring to split the OC axis.
    def _n_blocks(size, tile):
        return _round_up(size, tile) // tile

    while _n_blocks(m, tm) * _n_blocks(oc, tn) < 2:
        if tn > 128:
            tn //= 2
        elif tm > 256:
            tm = max(256, _round_up(tm // 2, 8))
        else:
            break

    mp, ocp, kp = _round_up(m, tm), _round_up(oc, tn), _round_up(k, tk)

    # Zero-pad so every tile is full.  K padding is required for a correct
    # reduction; M/OC padding keeps the MXU/stores dense.  Inputs are already
    # in compute_dtype, so the pad copies move at compute-dtype width.
    patches_p = jnp.pad(patches, ((0, mp - m), (0, kp - k)))
    w_p = jnp.pad(w_mat, ((0, kp - k), (0, ocp - oc)))
    b_p = jnp.pad(bias.astype(jnp.float32).reshape(1, oc),
                  ((0, 0), (0, ocp - oc)))                       # [1, OCp] f32

    grid = (mp // tm, ocp // tn, kp // tk)
    kernel = functools.partial(_equalised_matmul_kernel, c_scale=c_scale)

    elt = jnp.dtype(compute_dtype).itemsize
    out_elt = jnp.dtype(out_dtype).itemsize

    # Double-buffered VMEM footprint of one grid step (+ f32 accumulator).
    vmem_bytes = (2 * tm * tk * elt + 2 * tk * tn * elt + 2 * tn * 4
                  + 2 * tm * tn * out_elt + tm * tn * 4)
    # Sized to need (+ headroom), never a blanket 64 MiB: stay comfortably
    # under v7x's 64 MiB physical per-TC VMEM.
    vmem_limit = int(min(56 * 1024 * 1024,
                         max(32 * 1024 * 1024, vmem_bytes + 8 * 1024 * 1024)))

    gm, gn, gk = grid
    cost = pl.CostEstimate(
        flops=2 * mp * kp * ocp,                      # padded, consistent below
        transcendentals=0,
        bytes_accessed=int(gn * mp * kp * elt         # patches re-read per OC block
                           + gm * kp * ocp * elt      # weights re-read per M block
                           + mp * ocp * out_elt + ocp * 4),
    )

    out = pl.pallas_call(
        kernel,
        out_shape=jax.ShapeDtypeStruct((mp, ocp), out_dtype),
        grid_spec=pltpu.PrefetchScalarGridSpec(
            num_scalar_prefetch=0,
            grid=grid,
            in_specs=[
                # TODO(synk): if profiling shows exposed DMA on this (largest)
                # per-step transfer, bump it to pipeline_mode=pl.Buffered(3).
                pl.BlockSpec((tm, tk), lambda i, j, kk: (i, kk)),   # patches
                pl.BlockSpec((tk, tn), lambda i, j, kk: (kk, j)),   # weights
                pl.BlockSpec((1, tn), lambda i, j, kk: (0, j)),     # bias
            ],
            out_specs=pl.BlockSpec((tm, tn), lambda i, j, kk: (i, j)),
            scratch_shapes=[pltpu.VMEM((tm, tn), jnp.float32)],
        ),
        compiler_params=pltpu.CompilerParams(
            dimension_semantics=("parallel", "parallel", "arbitrary"),
            vmem_limit_bytes=vmem_limit,
        ),
        cost_estimate=cost,
    )(patches_p, w_p, b_p)

    # TODO(synk): small-OC layers (toRGB) still pay padded-OC output writes and
    # this slice copy; a lane-masked final-tile store (or bf16 out_dtype) would
    # trim them when the consumer allows.
    out = out[:m, :oc].reshape(n, oh, ow, oc)         # [N, OH, OW, OC]
    # TODO(synk): in a full NHWC pipeline this transpose would be dropped /
    # fused into the consumer; kept to match the PyTorch module's NCHW output.
    return jnp.transpose(out, (0, 3, 1, 2))           # NCHW


if __name__ == "__main__":
    key = jax.random.PRNGKey(0)
    kx, kw_ = jax.random.split(key)

    # Small shapes consistent with the module: N=2, Cin=4, H=W=16,
    # out_features=8, kernel_size=3, stride=1, padding=1, dilation=1.
    N, Cin, H, W = 2, 4, 16, 16
    OC, KH, KW = 8, 3, 3
    stride, padding, dilation = 1, 1, 1

    x = jax.random.normal(kx, (N, Cin, H, W), dtype=jnp.float32)
    weight = jax.random.normal(kw_, (OC, Cin, KH, KW), dtype=jnp.float32)
    bias = jnp.zeros((OC,), dtype=jnp.float32)        # module inits bias to zeros

    # Reference: XLA conv with the same equalised-lr semantics as F.conv2d.
    c_scale = 1.0 / math.sqrt(Cin * KH * KW)
    ref = jax.lax.conv_general_dilated(
        x, weight * c_scale,
        window_strides=(stride, stride),
        padding=((padding, padding), (padding, padding)),
        rhs_dilation=(dilation, dilation),
        dimension_numbers=("NCHW", "OIHW", "NCHW"),
    ) + bias.reshape(1, OC, 1, 1)

    # Strict-precision path (f32 MXU inputs) — test/verification only; on v5e
    # the production path should stay bf16.
    out_f32 = equalised_conv2d(x, weight, bias, stride=stride, padding=padding,
                               dilation=dilation, compute_dtype=jnp.float32)
    out_f32 = jax.block_until_ready(out_f32)
    assert out_f32.shape == (N, OC, H, W), out_f32.shape
    assert jnp.allclose(out_f32, ref, atol=1e-4, rtol=1e-4), \
        float(jnp.max(jnp.abs(out_f32 - ref)))

    # Default fast path (bf16 MXU inputs, f32 accumulate) — looser tolerance.
    out_bf16 = equalised_conv2d(x, weight, bias, stride=stride, padding=padding,
                                dilation=dilation)
    out_bf16 = jax.block_until_ready(out_bf16)
    assert out_bf16.shape == (N, OC, H, W), out_bf16.shape
    assert jnp.allclose(out_bf16, ref, atol=5e-2, rtol=5e-2), \
        float(jnp.max(jnp.abs(out_bf16 - ref)))

    print("KERNEL_OK")
</pallas_src>

<mosaic_0001>
module attributes {stable_mosaic.version = 11 : i64} {
  func.func @_equalised_matmul_kernel(%arg0: i32, %arg1: i32, %arg2: i32, %arg3: memref<256x128xf32, #tpu.memory_space<vmem>>, %arg4: memref<128x128xf32, #tpu.memory_space<vmem>>, %arg5: memref<1x128xf32, #tpu.memory_space<vmem>>, %arg6: memref<256x128xf32, #tpu.memory_space<vmem>>, %arg7: memref<256x128xf32, #tpu.memory_space<vmem>>) attributes {dimension_semantics = [#tpu.dimension_semantics<parallel>, #tpu.dimension_semantics<parallel>, #tpu.dimension_semantics<arbitrary>], iteration_bounds = array<i64: 2, 1, 1>, scalar_prefetch = 0 : i64, scratch_operands = 1 : i64, tpu.core_type = #tpu.core_type<tc>, window_params = [{transform_indices = @transform_0, window_bounds = array<i64: 256, 128>}, {transform_indices = @transform_1, window_bounds = array<i64: 128, 128>}, {transform_indices = @transform_2, window_bounds = array<i64: 1, 128>}, {transform_indices = @transform_3, window_bounds = array<i64: 256, 128>}]} {
    %c0_i32 = arith.constant 0 : i32
    %0 = arith.cmpi eq, %arg2, %c0_i32 : i32
    %1 = arith.extui %0 : i1 to i32
    %c0_i32_0 = arith.constant 0 : i32
    %2 = arith.cmpi ne, %1, %c0_i32_0 : i32
    scf.if %2 {
      %cst_10 = arith.constant 0.000000e+00 : f32
      %12 = vector.broadcast %cst_10 : f32 to vector<256x128xf32>
      %c0_11 = arith.constant 0 : index
      %c0_12 = arith.constant 0 : index
      %13 = vector.load %arg7[%c0_11, %c0_12] : memref<256x128xf32, #tpu.memory_space<vmem>>, vector<256x128xf32>
      tpu.vector_store %arg7[%c0_11, %c0_12], %12 {strides = array<i32>} : memref<256x128xf32, #tpu.memory_space<vmem>>, vector<256x128xf32>,
    } else {
    }
    %c0 = arith.constant 0 : index
    %c0_1 = arith.constant 0 : index
    %3 = vector.load %arg7[%c0, %c0_1] : memref<256x128xf32, #tpu.memory_space<vmem>>, vector<256x128xf32>
    %c0_2 = arith.constant 0 : index
    %c0_3 = arith.constant 0 : index
    %4 = vector.load %arg3[%c0_2, %c0_3] : memref<256x128xf32, #tpu.memory_space<vmem>>, vector<256x128xf32>
    %c0_4 = arith.constant 0 : index
    %c0_5 = arith.constant 0 : index
    %5 = vector.load %arg4[%c0_4, %c0_5] : memref<128x128xf32, #tpu.memory_space<vmem>>, vector<128x128xf32>
    %cst = arith.constant dense<0.000000e+00> : vector<256x128xf32>
    %6 = tpu.matmul %4, %5, %cst {dimension_numbers = #tpu.dot_dimension_numbers<[1], [0], [0], [1], [0, 0, 1, 1], [], []>} : vector<256x128xf32>, vector<128x128xf32>, vector<256x128xf32> -> vector<256x128xf32>
    %7 = arith.addf %3, %6 : vector<256x128xf32>
    %c0_6 = arith.constant 0 : index
    %c0_7 = arith.constant 0 : index
    %8 = vector.load %arg7[%c0_6, %c0_7] : memref<256x128xf32, #tpu.memory_space<vmem>>, vector<256x128xf32>
    tpu.vector_store %arg7[%c0_6, %c0_7], %7 {strides = array<i32>} : memref<256x128xf32, #tpu.memory_space<vmem>>, vector<256x128xf32>,
    %c0_i32_8 = arith.constant 0 : i32
    %9 = arith.cmpi eq, %arg2, %c0_i32_8 : i32
    %10 = arith.extui %9 : i1 to i32
    %c0_i32_9 = arith.constant 0 : i32
    %11 = arith.cmpi ne, %10, %c0_i32_9 : i32
    scf.if %11 {
      %c0_10 = arith.constant 0 : index
      %c0_11 = arith.constant 0 : index
      %12 = vector.load %arg7[%c0_10, %c0_11] : memref<256x128xf32, #tpu.memory_space<vmem>>, vector<256x128xf32>
      %cst_12 = arith.constant 0.166666672 : f32
      %13 = vector.broadcast %cst_12 : f32 to vector<256x128xf32>
      %14 = arith.mulf %12, %13 : vector<256x128xf32>
      %c0_13 = arith.constant 0 : index
      %c0_14 = arith.constant 0 : index
      %15 = vector.load %arg5[%c0_13, %c0_14] : memref<1x128xf32, #tpu.memory_space<vmem>>, vector<1x128xf32>
      %16 = vector.broadcast %15 : vector<1x128xf32> to vector<256x128xf32>
      %17 = arith.addf %14, %16 : vector<256x128xf32>
      %c0_15 = arith.constant 0 : index
      %c0_16 = arith.constant 0 : index
      %18 = vector.load %arg6[%c0_15, %c0_16] : memref<256x128xf32, #tpu.memory_space<vmem>>, vector<256x128xf32>
      tpu.vector_store %arg6[%c0_15, %c0_16], %17 {strides = array<i32>} : memref<256x128xf32, #tpu.memory_space<vmem>>, vector<256x128xf32>,
    } else {
    }
    return
  }
  func.func @transform_0(%arg0: i32, %arg1: i32, %arg2: i32) -> (i32, i32) {
    %c0_i32 = arith.constant 0 : i32
    return %arg0, %arg2 : i32, i32
  }
  func.func @transform_1(%arg0: i32, %arg1: i32, %arg2: i32) -> (i32, i32) {
    %c0_i32 = arith.constant 0 : i32
    return %arg2, %arg1 : i32, i32
  }
  func.func @transform_2(%arg0: i32, %arg1: i32, %arg2: i32) -> (i32, i32) {
    %c0_i32 = arith.constant 0 : i32
    %c0_i32_0 = arith.constant 0 : i32
    return %c0_i32, %arg1 : i32, i32
  }
  func.func @transform_3(%arg0: i32, %arg1: i32, %arg2: i32) -> (i32, i32) {
    %c0_i32 = arith.constant 0 : i32
    return %arg0, %arg1 : i32, i32
  }
}

</mosaic_0001>

<bundles_post_ra>
// kernel: tpu_custom_call.1
= control target key start
LH: loop header
LB: loop body
LE: loop exit
PB: predicated region body
PF: predicated region fallthrough
CT: control target
= control target key end

     0   :  { %8 = vsyncpa [#allocation4], 0  ;;  %s1710_s0 = inlined_call_operand.hbm [shape: f32[512,128], index: 0, kind: input, shape index: {}]   ;;  %s1711_s1 = inlined_call_operand.hbm [shape: f32[128,128], index: 1, kind: input, shape index: {}]   ;;  %s1712_s2 = inlined_call_operand.vmem [shape: f32[1,128], index: 2, kind: input, shape index: {}]   ;;  %s1713_s3 = inlined_call_operand.hbm [shape: f32[512,128], index: 3, kind: output, shape index: {}]  }
   0x1   :  { %10 = vsyncpa [#allocation4 + $0x1], 0 }
   0x2   :  { %11 = vsyncpa [#allocation7], 0 }
   0x3   :  { %12 = vsyncpa [#allocation5], 0 }
   0x4   :  { %14 = vsyncpa [#allocation5 + $0x1], 0  ;;  %s1375_s12 = smov 0   ;;  %s1377_s13 = smov 0  }
   0x5   :  { %s1379_s14 = smov 0   ;;  %s1381_s15 = smov 0  }
   0x6   :  { %s1383_s16 = smov 0   ;;  %s1385_s17 = smov 0  }
   0x7 LB: > { %s928_s18 = sadd.s32 4294967295, %s1346_s17   ;;  %s929_s19 = sadd.s32 4294967294, %s1346_s17   ;;  %s1346_s17 = sphi %s1385_s17, %s20_s17   ;;  %s1342_s16 = sphi %s1383_s16, %s1737_s16   ;;  %s1338_s15 = sphi %s1381_s15, %s1736_s15   ;;  %s1334_s14 = sphi %s1379_s14, %s1735_s14   ;;  %s1330_s13 = sphi %s1377_s13, %s1734_s13   ;;  %s1326_s12 = sphi %s1375_s12, %s1733_s12  }
   0x8   : > { %p61_p0 = scmp.ne.s32.totalorder %s1330_s13, %s1326_s12  ;;  %p1409_p1 = scmp.eq.s32.totalorder %s928_s18, 0 }
   0x9   : > { %p1413_p2 = scmp.eq.s32.totalorder %s928_s18, 1  ;;  %p147_p3 = scmp.eq.s32.totalorder %s929_s19, 1 }
   0xa   : > { %s1718_s20 = scalar_select %p1409_p1, 1, 0 }
   0xb   : > { %s1719_s21 = scalar_select %p1413_p2, 1, 0 }
   0xc   : > { %p1419_p4 = por %p1409_p1, %p61_p0  ;;  %p930_p5 = scmp.ge.s32.totalorder %s1346_s17, 1 }
   0xd   : > { %p1424_p6 = por %p147_p3, %p61_p0  ;;  %p154_p7 = scmp.lt.s32.totalorder %s1346_s17, 3 }
   0xe   : > { %s1720_s22 = scalar_select %p1419_p4, 1, 0 }
   0xf   : > { %s1721_s23 = scalar_select %p1424_p6, 1, 0 }
  0x10   : > { %p1429_p8 = pnand %p930_p5, %p154_p7  ;;  %s1348_s25 = smov [#allocation6]  }
  0x11   : > { %s170_s26 = sshll.u32 %s1348_s25, 4  ;;  %s39_s28 = sadd.s32 1, %s1342_s16  ;;  %s171_s26 = int_to_ptr.vmem [resolvable:$true] %s170_s26 }
  0x12   : > { %s1722_s24 = scalar_select %p1429_p8, 1, 0 }
  0x13   : > { %p1133_p9 = pneg %p1429_p8  ;;  %s1202_s4 = scalar_lea.hbm %s1711_s1, 2048 }
  0x14   : > { %p1203_p12 = scmp.ne.s32.totalorder %s1711_s1, %s1202_s4  ;;  %p1209_p5 = scmp.lt.u32.totalorder %s1202_s4, %s1711_s1 }
  0x15   : > { %p1438_p11 = pnand %p1133_p9, %p1409_p1 }
  0x17   : > { %p1204_p13 = pneg %p1438_p11 }
  0x19   : > { %p1205_p0 = pnand %p1204_p13, %p1203_p12 }
  0x1b   : > { %p1206_p3 = pneg %p1205_p0 }
  0x1d   : > { %p1211_p7 = pnand %p1209_p5, %p1206_p3 }
  0x1f   : > { %1214 = shalt.err (!%p1211_p7)
}
  0x20   : > { %s1215_s9 = scalar_lea.vmem %s171_s26, 2048  ;;  %p1223_p1 = scmp.lt.s32.totalorder %s171_s26, %s171_s26 }
  0x21   : > { %p1216_p9 = scmp.ne.s32.totalorder %s171_s26, %s1215_s9  ;;  %p1224_p4 = scmp.lt.s32.totalorder %s1215_s9, %s1215_s9 }
  0x23   : > { %p1218_p10 = pnand %p1216_p9, %p1204_p13  ;;  %p1225_p8 = por %p1224_p4, %p1223_p1 }
  0x25   : > { %p1219_p6 = pneg %p1218_p10 }
  0x27   : > { %p1226_p2 = pnand %p1225_p8, %p1219_p6 }
  0x29   : > { %1229 = shalt.err (!%p1226_p2)
}
  0x2a   : > { %s1349_s10 = smov 128   ;;  %s1350_s11 = smov 8  }
  0x2b   : > { %1136 = dma.hbm_to_vmem [thread:$0]  (!%p1438_p11), %s1711_s1, 2048, %s171_s26, [#allocation7], %s1349_s10, %s1349_s10, %s1350_s11  }
  0x2c   : > { %p41_p1 = scmp.ge.s32.totalorder %s39_s28, 2  ;;  %s48_s25 = sadd.s32 1, %s1334_s14 }
  0x2d   : > { %p55_p2 = scmp.ne.s32.totalorder %s1334_s14, %s1330_s13  ;;  %p56_p4 = scmp.eq.s32.totalorder %s1346_s17, 0 }
  0x2e   : > { %s1739_s28 = smov (%p41_p1, %s39_s28), 0  ;;  %p1725_p8 = scmp.ne.s32.totalorder %s1719_s21, 0 }
  0x2f   : > { %p1468_p6 = por %p56_p4, %p55_p2  ;;  %s43_s30 = ssub.s32 %s1342_s16, %s1739_s28 }
  0x30   : > { %p1474_p10 = por %p1725_p8, %p55_p2  ;;  %p1146_p12 = scmp.lt.s32.totalorder %s1346_s17, 2 }
  0x31   : > { %p46_p11 = scmp.eq.s32.totalorder %s43_s30, 0  ;;  %s190_s26 = sand.u32 1, %s1334_s14  }
  0x32   : > { %s934_s4 = sshll.u32 %s190_s26, 8  ;;  %s947_s6 = sshll.u32 %s1342_s16, 12 }
  0x33   : > { %s1483_s5 = scalar_select %p46_p11, %s1334_s14, %s48_s25  }
  0x34   : > { %s1489_s9 = scalar_lea.hbm %s1710_s0, %s947_s6  ;;  %s194_s21 = scalar_lea.vmem [#allocation3], %s934_s4 }
  0x35   : > { %s202_s18 = sshll.u32 %s194_s21, 4  ;;  %p1495_p13 = pnand %p1146_p12, %p1468_p6  ;;  %s1491_s18 = int_to_ptr.vmem [resolvable:$true] %s202_s18 }
  0x36   : > { %s1499_s25 = scalar_lea.sflag [#allocation4], %s190_s26  ;;  %s1230_s30 = scalar_lea.hbm %s1489_s9, 4096 }
  0x37   : > { %p1231_p0 = scmp.ne.s32.totalorder %s1489_s9, %s1230_s30  ;;  %p1232_p3 = pneg %p1495_p13 }
  0x38   : > { %s1235_s29 = scalar_lea.hbm %s1710_s0, 8192  ;;  %p1236_p9 = scmp.lt.u32.totalorder %s1489_s9, %s1710_s0 }
  0x39   : > { %p1233_p5 = pnand %p1232_p3, %p1231_p0  ;;  %p1237_p1 = scmp.lt.u32.totalorder %s1235_s29, %s1230_s30 }
  0x3a   : > { %p1239_p4 = scmp.lt.u32.totalorder %s1230_s30, %s1489_s9 }
  0x3b   : > { %p1234_p7 = pneg %p1233_p5  ;;  %p1238_p2 = por %p1237_p1, %p1236_p9 }
  0x3d   : > { %p1240_p6 = por %p1239_p4, %p1238_p2 }
  0x3f   : > { %p1241_p8 = pnand %p1240_p6, %p1234_p7 }
  0x41   : > { %1244 = shalt.err (!%p1241_p8)
}
  0x42   : > { %s1245_s26 = scalar_lea.vmem %s1491_s18, 4096  ;;  %s1351_s21 = smov [#allocation3]  }
  0x43   : > { %p1246_p12 = scmp.ne.s32.totalorder %s1491_s18, %s1245_s26  ;;  %s1250_s4 = sshll.u32 %s1351_s21, 4  ;;  %s1251_s4 = int_to_ptr.vmem [resolvable:$false] %s1250_s4 }
  0x44   : > { %s1252_s6 = scalar_lea.vmem %s1251_s4, 8192  ;;  %p1253_p5 = scmp.lt.s32.totalorder %s1491_s18, %s1251_s4 }
  0x45   : > { %p1248_p11 = pnand %p1246_p12, %p1232_p3  ;;  %p1254_p9 = scmp.lt.s32.totalorder %s1252_s6, %s1245_s26 }
  0x47   : > { %p1249_p0 = pneg %p1248_p11  ;;  %p1255_p1 = por %p1254_p9, %p1253_p5 }
  0x49   : > { %p1256_p2 = pnand %p1255_p1, %p1249_p0 }
  0x4b   : > { %1259 = shalt.err (!%p1256_p2)
}
  0x4c   : > { %1140 = dma.hbm_to_vmem [thread:$0]  (!%p1495_p13), %s1489_s9, 4096, %s1491_s18, %s1499_s25, %s1349_s10, %s1349_s10, %s1350_s11  }
  0x4d   : > { %p1728_p3 = scmp.ne.s32.totalorder %s1722_s24, 0 }
  0x4e   : > { %s1533_s30 = sand.u32 (!%p1728_p3), 1, %s1330_s13   ;;  %p1729_p7 = scmp.ne.s32.totalorder (!%p1728_p3), %s1720_s22, 0 }
  0x4f   : > { %214 = sbr.rel (%p1728_p3) target bundleno = 386 (0x182), region = 32  ;;  %s938_s29 = sshll.u32 (!%p1728_p3), %s1533_s30, 8 }
  0x50   : > { %s217_s7 = scalar_lea.sflag (!%p1728_p3), [#allocation4], %s1533_s30  ;;  %s1539_s19 = scalar_lea.vmem (!%p1728_p3), [#allocation3], %s938_s29 }
  0x56   : > { %1313 = dma.done.wait (%p1729_p7), %s217_s7, 4096  }
  0x57   : > { %1315 = vsyncadd (%p1729_p7), %s217_s7, 4294963200  ;;  %p1730_p13 = scmp.ne.s32.totalorder %s1718_s20, 0 }
  0x59   : > { %1317 = dma.done.wait (%p1730_p13), [#allocation7], 2048  }
  0x5a   : > { %1319 = vsyncadd (%p1730_p13), [#allocation7], 4294965248  ;;  %v356_v0 = vld [vmem:[#allocation6] sm:$0xff]  ;;  %v357_v1 = vld [vmem:[#allocation6 + $0x8] sm:$0xff]  ;;  %s1592_s24 = scalar_lea.vmem [#allocation8], %s938_s29  ;;  %s948_s10 = sshll.u32 %s1338_s15, 12 }
  0x5b   : > { %v358_v2 = vld [vmem:[#allocation6 + $0x10] sm:$0xff]  ;;  %v1077_v3 = vpack.c.bf16 %v357_v1, %v356_v0  ;;  %v359_v4 = vld [vmem:[#allocation6 + $0x18] sm:$0xff]  ;;  %v360_v6 = vld [vmem:[#allocation6 + $0x20] sm:$0xff]  ;;  %s814_s11 = sshll.u32 %s1592_s24, 4  ;;  %s1653_s18 = scalar_lea.hbm %s1713_s3, %s948_s10  ;;  %s1655_s11 = int_to_ptr.vmem [resolvable:$true] %s814_s11 }
  0x5c   : > { %v1081_v5 = vpack.c.bf16 %v359_v4, %v358_v2  ;;  %v361_v7 = vld [vmem:[#allocation6 + $0x28] sm:$0xff]  ;;  %v324_v9 = vld [vmem:[%s1539_s19] sm:$0xff]  ;;  %v362_v11 = vld [vmem:[#allocation6 + $0x30] sm:$0xff]  ;;  %s800_s25 = scalar_lea.sflag [#allocation5], %s1533_s30  ;;  %s1260_s8 = scalar_lea.vmem %s1655_s11, 4096 }
  0x5d   : > { %1078 = vmatprep.subr.bf16.mxu0 %v1077_v3  ;;  %1109 = vmatprep.subr.bf16.mxu1 %v1077_v3  ;;  %v1085_v8 = vpack.c.bf16 %v361_v7, %v360_v6  ;;  %v340_v10 = vld [vmem:[%s1539_s19 + $0x80] sm:$0xff]  ;;  %v363_v12 = vld [vmem:[#allocation6 + $0x38] sm:$0xff]  ;;  %v365_v15 = vld [vmem:[#allocation6 + $0x48] sm:$0xff]  ;;  %p1261_p4 = scmp.ne.s32.totalorder %s1655_s11, %s1260_s8  ;;  %s1352_s26 = smov [#allocation8]  }
  0x5e   : > { %1080 = vmatpush3.bf16.msra.mxu0 %v1077_v3  ;;  %1117 = vmatpush3.bf16.msra.mxu1 %v1077_v3  ;;  %v1089_v13 = vpack.c.bf16 %v363_v12, %v362_v11  ;;  %v364_v14 = vld [vmem:[#allocation6 + $0x40] sm:$0xff]  ;;  %v366_v17 = vld [vmem:[#allocation6 + $0x50] sm:$0xff]  ;;  %v367_v18 = vld [vmem:[#allocation6 + $0x58] sm:$0xff]  ;;  %s1264_s21 = sshll.u32 %s1352_s26, 4  ;;  %s1265_s21 = int_to_ptr.vmem [resolvable:$false] %s1264_s21 }
  0x5f   : > { %1082 = vmatprep.subr.bf16.mxu0 %v1081_v5  ;;  %1110 = vmatprep.subr.bf16.mxu1 %v1081_v5  ;;  %v1093_v16 = vpack.c.bf16 %v365_v15, %v364_v14  ;;  %v1097_v19 = vpack.c.bf16 %v367_v18, %v366_v17  ;;  %v368_v20 = vld [vmem:[#allocation6 + $0x60] sm:$0xff]  ;;  %v369_v21 = vld [vmem:[#allocation6 + $0x68] sm:$0xff]  ;;  %v370_v23 = vld [vmem:[#allocation6 + $0x70] sm:$0xff]  ;;  %p1262_p6 = pnand %p1261_p4, %p1474_p10  ;;  %s1266_s4 = scalar_lea.vmem %s1265_s21, 8192 }
  0x60   : > { %1029 = vmatprep.mubr.f32.mxu0 %v324_v9  ;;  %1053 = vmatprep.mubr.f32.mxu1 %v340_v10  ;;  %v1101_v22 = vpack.c.bf16 %v369_v21, %v368_v20  ;;  %v371_v24 = vld [vmem:[#allocation6 + $0x78] sm:$0xff]  ;;  %v325_v26 = vld [vmem:[%s1539_s19 + $0x8] sm:$0xff]  ;;  %v326_v28 = vld [vmem:[%s1539_s19 + $0x10] sm:$0xff]  ;;  %p1267_p12 = scmp.lt.s32.totalorder %s1655_s11, %s1265_s21  ;;  %p1268_p11 = scmp.lt.s32.totalorder %s1266_s4, %s1260_s8 }
  0x61   : > { %v1105_v25 = vpack.c.bf16 %v371_v24, %v370_v23  ;;  %v341_v27 = vld [vmem:[%s1539_s19 + $0x88] sm:$0xff]  ;;  %v342_v29 = vld [vmem:[%s1539_s19 + $0x90] sm:$0xff]  ;;  %v327_v30 = vld [vmem:[%s1539_s19 + $0x18] sm:$0xff]  ;;  %p1263_p8 = pneg %p1262_p6 }
  0x62   : > { %1084 = vmatpush3.bf16.msra.mxu0 %v1081_v5  ;;  %1118 = vmatpush3.bf16.msra.mxu1 %v1081_v5  ;;  %v343_v31 = vld [vmem:[%s1539_s19 + $0x98] sm:$0xff]  ;;  %v328_v32 = vld [vmem:[%s1539_s19 + $0x20] sm:$0xff]  ;;  %v329_v34 = vld [vmem:[%s1539_s19 + $0x28] sm:$0xff]  ;;  %p1269_p0 = por %p1268_p11, %p1267_p12 }
  0x63   : > { %1086 = vmatprep.subr.bf16.mxu0 %v1085_v8  ;;  %1111 = vmatprep.subr.bf16.mxu1 %v1085_v8  ;;  %v344_v33 = vld [vmem:[%s1539_s19 + $0xa0] sm:$0xff]  ;;  %v345_v35 = vld [vmem:[%s1539_s19 + $0xa8] sm:$0xff]  ;;  %v330_v36 = vld [vmem:[%s1539_s19 + $0x30] sm:$0xff] }
  0x64   : > { %v346_v37 = vld [vmem:[%s1539_s19 + $0xb0] sm:$0xff]  ;;  %v331_v38 = vld [vmem:[%s1539_s19 + $0x38] sm:$0xff]  ;;  %v332_v40 = vld [vmem:[%s1539_s19 + $0x40] sm:$0xff]  ;;  %p1270_p5 = pnand %p1269_p0, %p1263_p8 }
  0x65   : > { %v347_v39 = vld [vmem:[%s1539_s19 + $0xb8] sm:$0xff]  ;;  %v348_v41 = vld [vmem:[%s1539_s19 + $0xc0] sm:$0xff]  ;;  %v333_v42 = vld [vmem:[%s1539_s19 + $0x48] sm:$0xff] }
  0x66   : > { %1088 = vmatpush3.bf16.msra.mxu0 %v1085_v8  ;;  %1119 = vmatpush3.bf16.msra.mxu1 %v1085_v8  ;;  %v349_v43 = vld [vmem:[%s1539_s19 + $0xc8] sm:$0xff]  ;;  %v334_v44 = vld [vmem:[%s1539_s19 + $0x50] sm:$0xff]  ;;  %v335_v46 = vld [vmem:[%s1539_s19 + $0x58] sm:$0xff] }
  0x67   : > { %1090 = vmatprep.subr.bf16.mxu0 %v1089_v13  ;;  %1112 = vmatprep.subr.bf16.mxu1 %v1089_v13  ;;  %v350_v45 = vld [vmem:[%s1539_s19 + $0xd0] sm:$0xff]  ;;  %v351_v47 = vld [vmem:[%s1539_s19 + $0xd8] sm:$0xff]  ;;  %v336_v48 = vld [vmem:[%s1539_s19 + $0x60] sm:$0xff] }
  0x68   : > { %v352_v49 = vld [vmem:[%s1539_s19 + $0xe0] sm:$0xff]  ;;  %v337_v50 = vld [vmem:[%s1539_s19 + $0x68] sm:$0xff]  ;;  %v338_v52 = vld [vmem:[%s1539_s19 + $0x70] sm:$0xff] }
  0x69   : > { %v353_v51 = vld [vmem:[%s1539_s19 + $0xe8] sm:$0xff]  ;;  %v354_v53 = vld [vmem:[%s1539_s19 + $0xf0] sm:$0xff]  ;;  %v339_v54 = vld [vmem:[%s1539_s19 + $0x78] sm:$0xff] }
  0x6a   : > { %1092 = vmatpush3.bf16.msra.mxu0 %v1089_v13  ;;  %1120 = vmatpush3.bf16.msra.mxu1 %v1089_v13  ;;  %v355_v55 = vld [vmem:[%s1539_s19 + $0xf8] sm:$0xff]  ;;  %v1584_v57 = vld [vmem:[%s1712_s2] ss:$0 sm:$0xff] }
  0x6b   : > { %1094 = vmatprep.subr.bf16.mxu0 %v1093_v16  ;;  %1113 = vmatprep.subr.bf16.mxu1 %v1093_v16 }
  0x6e   : > { %1096 = vmatpush3.bf16.msra.mxu0 %v1093_v16  ;;  %1121 = vmatpush3.bf16.msra.mxu1 %v1093_v16 }
  0x6f   : > { %1098 = vmatprep.subr.bf16.mxu0 %v1097_v19  ;;  %1114 = vmatprep.subr.bf16.mxu1 %v1097_v19 }
  0x72   : > { %1100 = vmatpush3.bf16.msra.mxu0 %v1097_v19  ;;  %1122 = vmatpush3.bf16.msra.mxu1 %v1097_v19 }
  0x73   : > { %1102 = vmatprep.subr.bf16.mxu0 %v1101_v22  ;;  %1115 = vmatprep.subr.bf16.mxu1 %v1101_v22 }
  0x76   : > { %1104 = vmatpush3.bf16.msra.mxu0 %v1101_v22  ;;  %1123 = vmatpush3.bf16.msra.mxu1 %v1101_v22 }
  0x77   : > { %1106 = vmatprep.subr.bf16.mxu0 %v1105_v25  ;;  %1116 = vmatprep.subr.bf16.mxu1 %v1105_v25 }
  0x7a   : > { %1108 = vmatpush3.bf16.msra.mxu0 %v1105_v25  ;;  %1124 = vmatpush3.bf16.msra.mxu1 %v1105_v25 }
  0x7d   : > { %1030 = vmatmul.mubr.f32.vlgmr.msra.gmra.mrb[0].mxu0 %v325_v26  ;;  %1054 = vmatmul.mubr.f32.vlgmr.msra.gmra.mrb[0].mxu1 %v341_v27 }
  0x7e   : > { %1032 = vmatprep.mubr.f32.mxu0 %v326_v28  ;;  %1056 = vmatprep.mubr.f32.mxu1 %v342_v29 }
  0x81   : > { %1033 = vmatmul.mubr.f32.gmra.mrb[2].mxu0 %v327_v30  ;;  %1057 = vmatmul.mubr.f32.gmra.mrb[2].mxu1 %v343_v31 }
  0x82   : > { %1035 = vmatprep.mubr.f32.mxu0 %v328_v32  ;;  %1059 = vmatprep.mubr.f32.mxu1 %v344_v33 }
  0x85   : > { %1036 = vmatmul.mubr.f32.gmra.mrb[4].mxu0 %v329_v34  ;;  %1060 = vmatmul.mubr.f32.gmra.mrb[4].mxu1 %v345_v35 }
  0x86   : > { %1038 = vmatprep.mubr.f32.mxu0 %v330_v36  ;;  %1062 = vmatprep.mubr.f32.mxu1 %v346_v37 }
  0x89   : > { %1039 = vmatmul.mubr.f32.gmra.mrb[6].mxu0 %v331_v38  ;;  %1063 = vmatmul.mubr.f32.gmra.mrb[6].mxu1 %v347_v39 }
  0x8a   : > { %1041 = vmatprep.mubr.f32.mxu0 %v332_v40  ;;  %1065 = vmatprep.mubr.f32.mxu1 %v348_v41 }
  0x8d   : > { %1042 = vmatmul.mubr.f32.gmra.mrb[8].mxu0 %v333_v42  ;;  %1066 = vmatmul.mubr.f32.gmra.mrb[8].mxu1 %v349_v43 }
  0x8e   : > { %1044 = vmatprep.mubr.f32.mxu0 %v334_v44  ;;  %1068 = vmatprep.mubr.f32.mxu1 %v350_v45 }
  0x91   : > { %1045 = vmatmul.mubr.f32.gmra.mrb[10].mxu0 %v335_v46  ;;  %1069 = vmatmul.mubr.f32.gmra.mrb[10].mxu1 %v351_v47 }
  0x92   : > { %1047 = vmatprep.mubr.f32.mxu0 %v336_v48  ;;  %1071 = vmatprep.mubr.f32.mxu1 %v352_v49 }
  0x95   : > { %1048 = vmatmul.mubr.f32.gmra.mrb[12].mxu0 %v337_v50  ;;  %1072 = vmatmul.mubr.f32.gmra.mrb[12].mxu1 %v353_v51 }
  0x96   : > { %1050 = vmatprep.mubr.f32.mxu0 %v338_v52  ;;  %1074 = vmatprep.mubr.f32.mxu1 %v354_v53 }
  0x99   : > { %1051 = vmatmul.mubr.f32.gmra.mrb[14].mxu0 %v339_v54  ;;  %1075 = vmatmul.mubr.f32.gmra.mrb[14].mxu1 %v355_v55 }
 0x150   : > { %v1031_v56 = vpop.f32.mrb[0].mxu0  ;;  %v1055_v58 = vpop.f32.mrb[0].mxu1 }
 0x151   : > { %v697_v59 = vmul.f32 0.16666667, %v1031_v56  ;;  %v713_v60 = vmul.f32 0.16666667, %v1055_v58  ;;  %v438_v61 = vpop.f32.mrb[1].mxu0  ;;  %v518_v62 = vpop.f32.mrb[1].mxu1 }
 0x152   : > { %v696_v63 = vmul.f32 0.16666667, %v438_v61  ;;  %v712_v0 = vmul.f32 0.16666667, %v518_v62 }
 0x153   : > { %v736_v1 = vadd.f32 %v1584_v57, %v697_v59  ;;  %v752_v2 = vadd.f32 %v1584_v57, %v713_v60 }
 0x154   : > { %v735_v3 = vadd.f32 %v1584_v57, %v696_v63  ;;  %v751_v4 = vadd.f32 %v1584_v57, %v712_v0  ;;  %v1034_v5 = vpop.f32.mrb[2].mxu0  ;;  %v1058_v6 = vpop.f32.mrb[2].mxu1 }
 0x155   : > { %768 = vst [vmem:[%s1592_s24 + $0x8] sm:$0xff] %v736_v1  ;;  %784 = vst [vmem:[%s1592_s24 + $0x88] sm:$0xff] %v752_v2  ;;  %v699_v7 = vmul.f32 0.16666667, %v1034_v5  ;;  %v715_v8 = vmul.f32 0.16666667, %v1058_v6 }
 0x156   : > { %v448_v9 = vpop.f32.mrb[3].mxu0  ;;  %v528_v10 = vpop.f32.mrb[3].mxu1  ;;  %767 = vst [vmem:[%s1592_s24] sm:$0xff] %v735_v3  ;;  %783 = vst [vmem:[%s1592_s24 + $0x80] sm:$0xff] %v751_v4 }
 0x157   : > { %v698_v11 = vmul.f32 0.16666667, %v448_v9  ;;  %v714_v12 = vmul.f32 0.16666667, %v528_v10  ;;  %v738_v13 = vadd.f32 %v1584_v57, %v699_v7  ;;  %v754_v14 = vadd.f32 %v1584_v57, %v715_v8 }
 0x158   : > { %v1037_v17 = vpop.f32.mrb[4].mxu0  ;;  %v1061_v18 = vpop.f32.mrb[4].mxu1 }
 0x159   : > { %v737_v15 = vadd.f32 %v1584_v57, %v698_v11  ;;  %v753_v16 = vadd.f32 %v1584_v57, %v714_v12  ;;  %770 = vst [vmem:[%s1592_s24 + $0x18] sm:$0xff] %v738_v13  ;;  %786 = vst [vmem:[%s1592_s24 + $0x98] sm:$0xff] %v754_v14  ;;  %v701_v19 = vmul.f32 0.16666667, %v1037_v17  ;;  %v717_v20 = vmul.f32 0.16666667, %v1061_v18 }
 0x15a   : > { %v458_v21 = vpop.f32.mrb[5].mxu0  ;;  %v538_v22 = vpop.f32.mrb[5].mxu1 }
 0x15b   : > { %769 = vst [vmem:[%s1592_s24 + $0x10] sm:$0xff] %v737_v15  ;;  %785 = vst [vmem:[%s1592_s24 + $0x90] sm:$0xff] %v753_v16  ;;  %v700_v23 = vmul.f32 0.16666667, %v458_v21  ;;  %v716_v24 = vmul.f32 0.16666667, %v538_v22  ;;  %v740_v25 = vadd.f32 %v1584_v57, %v701_v19  ;;  %v756_v26 = vadd.f32 %v1584_v57, %v717_v20 }
 0x15c   : > { %v1040_v29 = vpop.f32.mrb[6].mxu0  ;;  %v1064_v30 = vpop.f32.mrb[6].mxu1 }
 0x15d   : > { %v739_v27 = vadd.f32 %v1584_v57, %v700_v23  ;;  %v755_v28 = vadd.f32 %v1584_v57, %v716_v24  ;;  %772 = vst [vmem:[%s1592_s24 + $0x28] sm:$0xff] %v740_v25  ;;  %788 = vst [vmem:[%s1592_s24 + $0xa8] sm:$0xff] %v756_v26  ;;  %v703_v31 = vmul.f32 0.16666667, %v1040_v29  ;;  %v719_v32 = vmul.f32 0.16666667, %v1064_v30 }
 0x15e   : > { %v468_v33 = vpop.f32.mrb[7].mxu0  ;;  %v548_v34 = vpop.f32.mrb[7].mxu1 }
 0x15f   : > { %771 = vst [vmem:[%s1592_s24 + $0x20] sm:$0xff] %v739_v27  ;;  %787 = vst [vmem:[%s1592_s24 + $0xa0] sm:$0xff] %v755_v28  ;;  %v702_v35 = vmul.f32 0.16666667, %v468_v33  ;;  %v718_v36 = vmul.f32 0.16666667, %v548_v34  ;;  %v742_v37 = vadd.f32 %v1584_v57, %v703_v31  ;;  %v758_v38 = vadd.f32 %v1584_v57, %v719_v32 }
 0x160   : > { %v1043_v41 = vpop.f32.mrb[8].mxu0  ;;  %v1067_v42 = vpop.f32.mrb[8].mxu1 }
 0x161   : > { %v741_v39 = vadd.f32 %v1584_v57, %v702_v35  ;;  %v757_v40 = vadd.f32 %v1584_v57, %v718_v36  ;;  %774 = vst [vmem:[%s1592_s24 + $0x38] sm:$0xff] %v742_v37  ;;  %790 = vst [vmem:[%s1592_s24 + $0xb8] sm:$0xff] %v758_v38  ;;  %v705_v43 = vmul.f32 0.16666667, %v1043_v41  ;;  %v721_v44 = vmul.f32 0.16666667, %v1067_v42 }
 0x162   : > { %v478_v45 = vpop.f32.mrb[9].mxu0  ;;  %v558_v46 = vpop.f32.mrb[9].mxu1 }
 0x163   : > { %773 = vst [vmem:[%s1592_s24 + $0x30] sm:$0xff] %v741_v39  ;;  %789 = vst [vmem:[%s1592_s24 + $0xb0] sm:$0xff] %v757_v40  ;;  %v704_v47 = vmul.f32 0.16666667, %v478_v45  ;;  %v720_v48 = vmul.f32 0.16666667, %v558_v46  ;;  %v744_v49 = vadd.f32 %v1584_v57, %v705_v43  ;;  %v760_v50 = vadd.f32 %v1584_v57, %v721_v44 }
 0x164   : > { %v1046_v53 = vpop.f32.mrb[10].mxu0  ;;  %v1070_v54 = vpop.f32.mrb[10].mxu1 }
 0x165   : > { %v743_v51 = vadd.f32 %v1584_v57, %v704_v47  ;;  %v759_v52 = vadd.f32 %v1584_v57, %v720_v48  ;;  %776 = vst [vmem:[%s1592_s24 + $0x48] sm:$0xff] %v744_v49  ;;  %792 = vst [vmem:[%s1592_s24 + $0xc8] sm:$0xff] %v760_v50  ;;  %v707_v55 = vmul.f32 0.16666667, %v1046_v53  ;;  %v723_v56 = vmul.f32 0.16666667, %v1070_v54 }
 0x166   : > { %v488_v58 = vpop.f32.mrb[11].mxu0  ;;  %v568_v59 = vpop.f32.mrb[11].mxu1 }
 0x167   : > { %775 = vst [vmem:[%s1592_s24 + $0x40] sm:$0xff] %v743_v51  ;;  %791 = vst [vmem:[%s1592_s24 + $0xc0] sm:$0xff] %v759_v52  ;;  %v706_v60 = vmul.f32 0.16666667, %v488_v58  ;;  %v722_v61 = vmul.f32 0.16666667, %v568_v59  ;;  %v746_v62 = vadd.f32 %v1584_v57, %v707_v55  ;;  %v762_v63 = vadd.f32 %v1584_v57, %v723_v56 }
 0x168   : > { %v1049_v2 = vpop.f32.mrb[12].mxu0  ;;  %v1073_v3 = vpop.f32.mrb[12].mxu1 }
 0x169   : > { %v745_v0 = vadd.f32 %v1584_v57, %v706_v60  ;;  %v761_v1 = vadd.f32 %v1584_v57, %v722_v61  ;;  %778 = vst [vmem:[%s1592_s24 + $0x58] sm:$0xff] %v746_v62  ;;  %794 = vst [vmem:[%s1592_s24 + $0xd8] sm:$0xff] %v762_v63  ;;  %v709_v4 = vmul.f32 0.16666667, %v1049_v2  ;;  %v725_v5 = vmul.f32 0.16666667, %v1073_v3 }
 0x16a   : > { %v498_v6 = vpop.f32.mrb[13].mxu0  ;;  %v578_v7 = vpop.f32.mrb[13].mxu1 }
 0x16b   : > { %777 = vst [vmem:[%s1592_s24 + $0x50] sm:$0xff] %v745_v0  ;;  %793 = vst [vmem:[%s1592_s24 + $0xd0] sm:$0xff] %v761_v1  ;;  %v708_v8 = vmul.f32 0.16666667, %v498_v6  ;;  %v724_v9 = vmul.f32 0.16666667, %v578_v7  ;;  %v748_v10 = vadd.f32 %v1584_v57, %v709_v4  ;;  %v764_v11 = vadd.f32 %v1584_v57, %v725_v5 }
 0x16c   : > { %v1052_v14 = vpop.f32.mrb[14].mxu0  ;;  %v1076_v15 = vpop.f32.mrb[14].mxu1 }
 0x16d   : > { %v747_v12 = vadd.f32 %v1584_v57, %v708_v8  ;;  %v763_v13 = vadd.f32 %v1584_v57, %v724_v9  ;;  %780 = vst [vmem:[%s1592_s24 + $0x68] sm:$0xff] %v748_v10  ;;  %796 = vst [vmem:[%s1592_s24 + $0xe8] sm:$0xff] %v764_v11  ;;  %v711_v16 = vmul.f32 0.16666667, %v1052_v14  ;;  %v727_v17 = vmul.f32 0.16666667, %v1076_v15 }
 0x16e   : > { %v508_v18 = vpop.f32.mrb[15].mxu0  ;;  %v588_v19 = vpop.f32.mrb[15].mxu1 }
 0x16f   : > { %779 = vst [vmem:[%s1592_s24 + $0x60] sm:$0xff] %v747_v12  ;;  %795 = vst [vmem:[%s1592_s24 + $0xe0] sm:$0xff] %v763_v13  ;;  %v710_v20 = vmul.f32 0.16666667, %v508_v18  ;;  %v726_v21 = vmul.f32 0.16666667, %v588_v19  ;;  %v750_v22 = vadd.f32 %v1584_v57, %v711_v16  ;;  %v766_v23 = vadd.f32 %v1584_v57, %v727_v17 }
 0x171   : > { %v749_v24 = vadd.f32 %v1584_v57, %v710_v20  ;;  %v765_v25 = vadd.f32 %v1584_v57, %v726_v21  ;;  %782 = vst [vmem:[%s1592_s24 + $0x78] sm:$0xff] %v750_v22  ;;  %798 = vst [vmem:[%s1592_s24 + $0xf8] sm:$0xff] %v766_v23 }
 0x173   : > { %781 = vst [vmem:[%s1592_s24 + $0x70] sm:$0xff] %v749_v24  ;;  %797 = vst [vmem:[%s1592_s24 + $0xf0] sm:$0xff] %v765_v25 }
 0x174   : > { %1273 = shalt.err (!%p1270_p5)
}
 0x175   : > { %s1274_s6 = scalar_lea.hbm %s1653_s18, 4096  ;;  %s1278_s19 = scalar_lea.hbm %s1713_s3, 8192 }
 0x176   : > { %p1275_p9 = scmp.ne.s32.totalorder %s1653_s18, %s1274_s6  ;;  %p1279_p3 = scmp.lt.u32.totalorder %s1653_s18, %s1713_s3 }
 0x177   : > { %p1280_p7 = scmp.lt.u32.totalorder %s1278_s19, %s1274_s6  ;;  %p1282_p4 = scmp.lt.u32.totalorder %s1274_s6, %s1653_s18 }
 0x178   : > { %p1276_p1 = pnand %p1275_p9, %p1474_p10 }
 0x179   : > { %p1281_p13 = por %p1280_p7, %p1279_p3 }
 0x17a   : > { %p1277_p2 = pneg %p1276_p1 }
 0x17b   : > { %p1283_p6 = por %p1282_p4, %p1281_p13 }
 0x17d   : > { %p1284_p8 = pnand %p1283_p6, %p1277_p2 }
 0x17f   : > { %1287 = shalt.err (!%p1284_p8)
}
 0x180   : > { %s1353_s24 = smov 128   ;;  %s1354_s10 = smov 8  }
 0x181   : > { %1131 = dma.vmem_to_hbm [thread:$0]  (%p1474_p10), %s1655_s11, 4096, %s1653_s18, %s800_s25, %s1353_s24, %s1353_s24, %s1354_s10  }
 0x182 PF: > { %s829_s15 = sand.u32 1, %s1326_s12   ;;  %p1731_p12 = scmp.ne.s32.totalorder %s1721_s23, 0 }
 0x183   : > { %p1732_p11 = scmp.ge.s32.totalorder %s1346_s17, 2  ;;  %s830_s9 = scalar_lea.sflag [#allocation5], %s829_s15 }
 0x185   : > { %p1142_p0 = pnand %p1732_p11, %p1731_p12 }
 0x187   : > { %1321 = dma.done.wait (!%p1142_p0), %s830_s9, 4096  }
 0x188   : > { %1323 = vsyncadd (!%p1142_p0), %s830_s9, 4294963200  ;;  %s20_s17 = sadd.s32 1, %s1346_s17   ;;  %s1733_s12 = smov %s1330_s13 }
 0x189   : > { %p17_p5 = scmp.ge.s32.totalorder %s20_s17, 4   ;;  %s1734_s13 = smov %s1334_s14 }
 0x18a   : > { %s1735_s14 = smov %s1483_s5  ;;  %s1736_s15 = smov %s1342_s16 }
 0x18b   : > { %s1737_s16 = smov %s1739_s28  ;;  %19 = sbr.rel (!%p17_p5) target bundleno = 7 (0x7), region = 93 }
 0x192   :  { %835 = vsyncpa [#allocation4], 1 }
 0x193   :  { %837 = vsyncpa [#allocation4 + $0x1], 1 }
 0x194   :  { %838 = vsyncpa [#allocation7], 1 }
 0x195   :  { %839 = vsyncpa [#allocation5], 1 }
 0x196   :  { %841 = vsyncpa [#allocation5 + $0x1], 1 }

</bundles_post_ra>
